<compile_context>
chip_gen: v6e
topology: v6e:2x2x1
jax: 0.10.0
libtpu: 0.0.40
codegen_flags: <defaults>
</compile_context>

<pallas_src>
import jax
import jax.numpy as jnp
from jax import lax
from jax.experimental import pallas as pl
from jax.experimental.pallas import tpu as pltpu


def _round_up(a: int, b: int) -> int:
    return (a + b - 1) // b * b


def _mlp_kernel(x_ref, w1_ref, b1_ref, w2_ref, b2_ref, o_ref):
    # x:  (TILE_B, d_in)   w1: (d_in, H_pad)   b1: (1, H_pad)
    # w2: (1, H_pad)       b2: SMEM (1, 1)     o:  (1, 1, TILE_B)
    x = x_ref[...]
    h = jnp.dot(x, w1_ref[...], preferred_element_type=jnp.float32)
    h = jnp.tanh(h + b1_ref[...])                      # (TILE_B, H_pad)

    # Second layer, lane-dense: contract hidden axis of (1, H_pad) with the
    # hidden axis of (TILE_B, H_pad) -> (1, TILE_B). Batch lands on lanes, so
    # the store below is a full-width vst (no (TILE_B, 1) masked store).
    y = lax.dot_general(
        w2_ref[...], h,
        dimension_numbers=(((1,), (1,)), ((), ())),
        preferred_element_type=jnp.float32,
    )                                                  # (1, TILE_B)
    y = jnp.tanh(y + b2_ref[0, 0])
    o_ref[...] = y[None].astype(o_ref.dtype)           # (1, 1, TILE_B)


def my_linear_forward(x, w1, b1, w2, b2, *, tile_b=None):
    """Fused forward: tanh(tanh(x @ w1 + b1) @ w2 + b2) -> (B, 1)."""
    B, d_in = x.shape
    H = w1.shape[1]
    assert w1.shape[0] == d_in and w2.shape == (H, 1)

    H_pad = _round_up(H, 128)
    if tile_b is None:
        # Lane-aligned batch tile; small batches use a single 128-row tile.
        tile_b = min(512, _round_up(max(B, 1), 128))
    B_pad = _round_up(B, tile_b)
    num_tiles = B_pad // tile_b

    f32 = jnp.float32
    # Zero padding is semantics-preserving: padded hidden columns give
    # tanh(0) = 0 and multiply a zero w2 entry; padded batch rows are sliced
    # off after the kernel.
    x_p = jnp.pad(x.astype(f32), ((0, B_pad - B), (0, 0)))
    w1_p = jnp.pad(w1.astype(f32), ((0, 0), (0, H_pad - H)))
    b1_p = jnp.pad(b1.reshape(1, H).astype(f32), ((0, 0), (0, H_pad - H)))
    w2_p = jnp.pad(w2.reshape(1, H).astype(f32), ((0, 0), (0, H_pad - H)))
    b2_s = b2.reshape(1, 1).astype(f32)

    # TODO(synk): for very large `dim` the resident W1 block would need its own
    # K/N tiling; fine for moderate sizes (this example: 32x128 f32 = 16 KiB).
    out = pl.pallas_call(
        _mlp_kernel,
        out_shape=jax.ShapeDtypeStruct((num_tiles, 1, tile_b), x.dtype),
        grid=(num_tiles,),
        in_specs=[
            # x: one batch tile per grid step (pipelined HBM->VMEM).
            pl.BlockSpec((tile_b, d_in), lambda i: (i, 0)),
            # Weights / biases: constant index_map -> stay resident in VMEM.
            pl.BlockSpec((d_in, H_pad), lambda i: (0, 0)),
            pl.BlockSpec((1, H_pad), lambda i: (0, 0)),
            pl.BlockSpec((1, H_pad), lambda i: (0, 0)),
            # b2 is a true scalar: keep it in SMEM, not a padded VMEM tile.
            pl.BlockSpec(memory_space=pltpu.MemorySpace.SMEM),
        ],
        out_specs=pl.BlockSpec((1, 1, tile_b), lambda i: (i, 0, 0)),
        compiler_params=pltpu.CompilerParams(
            # Independent batch tiles: shard grid across TCs on v7x megacore.
            dimension_semantics=("parallel",),
            vmem_limit_bytes=32 * 1024 * 1024,
        ),
    )(x_p, w1_p, b1_p, w2_p, b2_s)

    return out.reshape(B_pad)[:B].reshape(B, 1)


def init_params(key, dim):
    """Deterministic init matching nn.Linear shapes (uniform +/- 1/sqrt(fan_in))."""
    k1, k2, k3, k4 = jax.random.split(key, 4)
    in1, out1 = 2 * dim, 5 * dim
    in2, out2 = 5 * dim, 1
    bound1 = 1.0 / jnp.sqrt(in1)
    bound2 = 1.0 / jnp.sqrt(in2)
    # Stored transposed relative to torch: (in_features, out_features).
    w1 = jax.random.uniform(k1, (in1, out1), jnp.float32, -bound1, bound1)
    b1 = jax.random.uniform(k2, (1, out1), jnp.float32, -bound1, bound1)
    w2 = jax.random.uniform(k3, (in2, out2), jnp.float32, -bound2, bound2)
    b2 = jax.random.uniform(k4, (1, out2), jnp.float32, -bound2, bound2)
    return w1, b1, w2, b2


if __name__ == "__main__":
    dim = 16          # size_in
    batch = 8
    key = jax.random.PRNGKey(0)
    kx, kp, kx2 = jax.random.split(key, 3)

    w1, b1, w2, b2 = init_params(kp, dim)

    def ref_fn(xv):
        return jnp.tanh(jnp.tanh(xv @ w1 + b1) @ w2 + b2)

    # Small case (single batch tile).
    x = jax.random.normal(kx, (batch, 2 * dim), jnp.float32)
    out = jax.block_until_ready(my_linear_forward(x, w1, b1, w2, b2))
    assert out.shape == (batch, 1)
    assert jnp.allclose(out, ref_fn(x), atol=1e-5, rtol=1e-5)

    # Multi-tile + batch-remainder case (600 -> two 512-row tiles, padded).
    x2 = jax.random.normal(kx2, (600, 2 * dim), jnp.float32)
    out2 = jax.block_until_ready(my_linear_forward(x2, w1, b1, w2, b2))
    assert out2.shape == (600, 1)
    assert jnp.allclose(out2, ref_fn(x2), atol=1e-5, rtol=1e-5)

    print("KERNEL_OK")
</pallas_src>

<mosaic_0001>
module attributes {stable_mosaic.version = 11 : i64} {
  func.func @_mlp_kernel(%arg0: i32, %arg1: memref<128x32xf32, #tpu.memory_space<vmem>>, %arg2: memref<32x128xf32, #tpu.memory_space<vmem>>, %arg3: memref<1x128xf32, #tpu.memory_space<vmem>>, %arg4: memref<1x128xf32, #tpu.memory_space<vmem>>, %arg5: memref<1x1xf32, #tpu.memory_space<smem>>, %arg6: memref<1x1x128xf32, #tpu.memory_space<vmem>>) attributes {dimension_semantics = [#tpu.dimension_semantics<parallel>], iteration_bounds = array<i64: 1>, scalar_prefetch = 0 : i64, scratch_operands = 0 : i64, tpu.core_type = #tpu.core_type<tc>, window_params = [{transform_indices = @transform_0, window_bounds = array<i64: 128, 32>}, {pipeline_mode = #tpu.pipeline_mode<synchronous>, transform_indices = @transform_1, window_bounds = array<i64: 32, 128>}, {pipeline_mode = #tpu.pipeline_mode<synchronous>, transform_indices = @transform_2, window_bounds = array<i64: 1, 128>}, {pipeline_mode = #tpu.pipeline_mode<synchronous>, transform_indices = @transform_3, window_bounds = array<i64: 1, 128>}, {transform_indices = @transform_4, window_bounds = array<i64: 1, 1>}, {transform_indices = @transform_5, window_bounds = array<i64: 1, 1, 128>}]} {
    %c0 = arith.constant 0 : index
    %c0_0 = arith.constant 0 : index
    %0 = vector.load %arg1[%c0, %c0_0] : memref<128x32xf32, #tpu.memory_space<vmem>>, vector<128x32xf32>
    %c0_1 = arith.constant 0 : index
    %c0_2 = arith.constant 0 : index
    %1 = vector.load %arg2[%c0_1, %c0_2] : memref<32x128xf32, #tpu.memory_space<vmem>>, vector<32x128xf32>
    %cst = arith.constant dense<0.000000e+00> : vector<128x128xf32>
    %2 = tpu.matmul %0, %1, %cst {dimension_numbers = #tpu.dot_dimension_numbers<[1], [0], [0], [1], [0, 0, 1, 1], [], []>} : vector<128x32xf32>, vector<32x128xf32>, vector<128x128xf32> -> vector<128x128xf32>
    %c0_3 = arith.constant 0 : index
    %c0_4 = arith.constant 0 : index
    %3 = vector.load %arg3[%c0_3, %c0_4] : memref<1x128xf32, #tpu.memory_space<vmem>>, vector<1x128xf32>
    %4 = vector.broadcast %3 : vector<1x128xf32> to vector<128x128xf32>
    %5 = arith.addf %2, %4 : vector<128x128xf32>
    %6 = math.tanh %5 : vector<128x128xf32>
    %c0_5 = arith.constant 0 : index
    %c0_6 = arith.constant 0 : index
    %7 = vector.load %arg4[%c0_5, %c0_6] : memref<1x128xf32, #tpu.memory_space<vmem>>, vector<1x128xf32>
    %cst_7 = arith.constant dense<0.000000e+00> : vector<1x128xf32>
    %8 = tpu.matmul %7, %6, %cst_7 {dimension_numbers = #tpu.dot_dimension_numbers<[1], [1], [0], [0], [0, 0, 1, 0], [], []>} : vector<1x128xf32>, vector<128x128xf32>, vector<1x128xf32> -> vector<1x128xf32>
    %c0_8 = arith.constant 0 : index
    %c0_9 = arith.constant 0 : index
    %9 = memref.load %arg5[%c0_8, %c0_9] : memref<1x1xf32, #tpu.memory_space<smem>>
    %10 = vector.broadcast %9 : f32 to vector<1x128xf32>
    %11 = arith.addf %8, %10 : vector<1x128xf32>
    %12 = math.tanh %11 : vector<1x128xf32>
    %13 = vector.shape_cast %12 : vector<1x128xf32> to vector<1x1x128xf32>
    %c0_10 = arith.constant 0 : index
    %c0_11 = arith.constant 0 : index
    %c0_12 = arith.constant 0 : index
    %14 = vector.load %arg6[%c0_10, %c0_11, %c0_12] : memref<1x1x128xf32, #tpu.memory_space<vmem>>, vector<1x1x128xf32>
    tpu.vector_store %arg6[%c0_10, %c0_11, %c0_12], %13 {strides = array<i32>} : memref<1x1x128xf32, #tpu.memory_space<vmem>>, vector<1x1x128xf32>,
    return
  }
  func.func @transform_0(%arg0: i32) -> (i32, i32) {
    %c0_i32 = arith.constant 0 : i32
    %c0_i32_0 = arith.constant 0 : i32
    return %arg0, %c0_i32 : i32, i32
  }
  func.func @transform_1(%arg0: i32) -> (i32, i32) {
    %c0_i32 = arith.constant 0 : i32
    %c0_i32_0 = arith.constant 0 : i32
    %c0_i32_1 = arith.constant 0 : i32
    return %c0_i32, %c0_i32_0 : i32, i32
  }
  func.func @transform_2(%arg0: i32) -> (i32, i32) {
    %c0_i32 = arith.constant 0 : i32
    %c0_i32_0 = arith.constant 0 : i32
    %c0_i32_1 = arith.constant 0 : i32
    return %c0_i32, %c0_i32_0 : i32, i32
  }
  func.func @transform_3(%arg0: i32) -> (i32, i32) {
    %c0_i32 = arith.constant 0 : i32
    %c0_i32_0 = arith.constant 0 : i32
    %c0_i32_1 = arith.constant 0 : i32
    return %c0_i32, %c0_i32_0 : i32, i32
  }
  func.func @transform_4(%arg0: i32) -> (i32, i32) {
    %c0_i32 = arith.constant 0 : i32
    %c0_i32_0 = arith.constant 0 : i32
    %c0_i32_1 = arith.constant 0 : i32
    return %c0_i32, %c0_i32_0 : i32, i32
  }
  func.func @transform_5(%arg0: i32) -> (i32, i32, i32) {
    %c0_i32 = arith.constant 0 : i32
    %c0_i32_0 = arith.constant 0 : i32
    %c0_i32_1 = arith.constant 0 : i32
    return %arg0, %c0_i32, %c0_i32_0 : i32, i32, i32
  }
}

</mosaic_0001>

<bundles_post_ra>
// kernel: tpu_custom_call.1
= control target key start
LH: loop header
LB: loop body
LE: loop exit
PB: predicated region body
PF: predicated region fallthrough
CT: control target
= control target key end

     0   :  { %vm49_vm0 = vcmask 261120   ;;  %s693_s0 = inlined_call_operand.vmem [shape: f32[128,32], index: 0, kind: input, shape index: {}]   ;;  %s694_s1 = inlined_call_operand.vmem [shape: f32[32,128], index: 1, kind: input, shape index: {}]   ;;  %s695_s2 = inlined_call_operand.vmem [shape: f32[1,128], index: 2, kind: input, shape index: {}]   ;;  %s696_s3 = inlined_call_operand.vmem [shape: f32[1,128], index: 3, kind: input, shape index: {}]   ;;  %s697_s4 = inlined_call_operand.<no memory space> [shape: f32[1,1], index: 4, kind: input, shape index: {}]   ;;  %s698_s5 = inlined_call_operand.hbm [shape: f32[1,1,128], index: 5, kind: output, shape index: {}]  }
   0x1   :  { %v41_v0 = vld [vmem:[%s694_s1 + $0x18] sm:$0xff]  ;;  %v40_v1 = vld [vmem:[%s694_s1 + $0x10] sm:$0xff]  ;;  %v22_v2 = vld [vmem:[%s693_s0] sm:$0xff] }
   0x2   :  { %402 = vmatprep.subr.mxu0 %v41_v0  ;;  %v39_v3 = vld [vmem:[%s694_s1 + $0x8] sm:$0xff]  ;;  %410 = vmatprep.mubr.msk.f32.mxu0 %vm49_vm0, %v22_v2  ;;  %v38_v4 = vld [vmem:[%s694_s1] sm:$0xff] }
   0x3   :  { %403 = vmatpush3.msra.mxu0 %v41_v0  ;;  %v23_v5 = vld [vmem:[%s693_s0 + $0x8] sm:$0xff] }
   0x4   :  { %404 = vmatprep.subr.mxu0 %v40_v1 }
   0x5   :  { %405 = vmatpush3.msra.mxu0 %v40_v1 }
   0x6   :  { %406 = vmatprep.subr.mxu0 %v39_v3 }
   0x7   :  { %407 = vmatpush3.msra.mxu0 %v39_v3 }
   0x8   :  { %11 = vsyncpa [#allocation4], 0  ;;  %408 = vmatprep.subr.mxu0 %v38_v4  ;;  %v24_v6 = vld [vmem:[%s693_s0 + $0x10] sm:$0xff]  ;;  %v25_v7 = vld [vmem:[%s693_s0 + $0x18] sm:$0xff]  ;;  %v528_v20 = vmov 0.0   ;;  %vm529_vm1 = vmmov 0  }
   0x9   :  { %409 = vmatpush3.msra.mxu0 %v38_v4  ;;  %v26_v8 = vld [vmem:[%s693_s0 + $0x20] sm:$0xff]  ;;  %v27_v9 = vld [vmem:[%s693_s0 + $0x28] sm:$0xff]  ;;  %v28_v10 = vld [vmem:[%s693_s0 + $0x30] sm:$0xff]  ;;  %434 = vmatprep.subr.mxu1 %v528_v20  ;;  %s530_s10 = smov [#allocation3]  }
   0xa   :  { %411 = vmatmul.mubr.msk.f32.vlgmr.msra.gmra.mxu0 %vm49_vm0, %v23_v5  ;;  %v29_v11 = vld [vmem:[%s693_s0 + $0x38] sm:$0xff]  ;;  %v30_v12 = vld [vmem:[%s693_s0 + $0x40] sm:$0xff]  ;;  %v31_v13 = vld [vmem:[%s693_s0 + $0x48] sm:$0xff]  ;;  %466 = vmatprep.mubr.msk.f32.mxu1 %vm529_vm1, %v528_v20  ;;  %s340_s11 = sshll.u32 %s530_s10, 4  ;;  %s341_s11 = int_to_ptr.vmem [resolvable:$true] %s340_s11 }
   0xb   :  { %413 = vmatprep.mubr.msk.f32.mxu0 %vm49_vm0, %v24_v6  ;;  %v32_v14 = vld [vmem:[%s693_s0 + $0x50] sm:$0xff]  ;;  %v33_v15 = vld [vmem:[%s693_s0 + $0x58] sm:$0xff]  ;;  %v34_v16 = vld [vmem:[%s693_s0 + $0x60] sm:$0xff]  ;;  %s506_s12 = scalar_lea.vmem %s341_s11, 16  ;;  %s510_s13 = scalar_lea.vmem %s341_s11, 32 }
   0xc   :  { %v35_v17 = vld [vmem:[%s693_s0 + $0x68] sm:$0xff]  ;;  %v36_v18 = vld [vmem:[%s693_s0 + $0x70] sm:$0xff]  ;;  %v37_v19 = vld [vmem:[%s693_s0 + $0x78] sm:$0xff]  ;;  %p507_p0 = scmp.ne.s32.totalorder %s341_s11, %s506_s12  ;;  %p511_p1 = scmp.lt.s32.totalorder %s341_s11, %s341_s11 }
   0xd   :  { %v648_v35 = vld [vmem:[%s695_s2] ss:$0 sm:$0xff]  ;;  %p512_p2 = scmp.lt.s32.totalorder %s510_s13, %s506_s12 }
   0xe   :  { %414 = vmatmul.mubr.msk.f32.gmra.mxu0 %vm49_vm0, %v25_v7  ;;  %v259_v6 = vld [vmem:[%s696_s3] sm:$0x1]  ;;  %v261_v7 = vstv %s697_s4 }
   0xf   :  { %416 = vmatprep.mubr.msk.f32.mxu0 %vm49_vm0, %v26_v8  ;;  %p513_p3 = por %p512_p2, %p511_p1 }
  0x11   :  { %p514_p4 = pnand %p513_p3, %p507_p0 }
  0x12   :  { %417 = vmatmul.mubr.msk.f32.gmra.mxu0 %vm49_vm0, %v27_v9 }
  0x13   :  { %419 = vmatprep.mubr.msk.f32.mxu0 %vm49_vm0, %v28_v10 }
  0x16   :  { %420 = vmatmul.mubr.msk.f32.gmra.mxu0 %vm49_vm0, %v29_v11 }
  0x17   :  { %422 = vmatprep.mubr.msk.f32.mxu0 %vm49_vm0, %v30_v12 }
  0x1a   :  { %423 = vmatmul.mubr.msk.f32.gmra.mxu0 %vm49_vm0, %v31_v13 }
  0x1b   :  { %425 = vmatprep.mubr.msk.f32.mxu0 %vm49_vm0, %v32_v14 }
  0x1e   :  { %426 = vmatmul.mubr.msk.f32.gmra.mxu0 %vm49_vm0, %v33_v15 }
  0x1f   :  { %428 = vmatprep.mubr.msk.f32.mxu0 %vm49_vm0, %v34_v16 }
  0x22   :  { %429 = vmatmul.mubr.msk.f32.gmra.mxu0 %vm49_vm0, %v35_v17 }
  0x23   :  { %431 = vmatprep.mubr.msk.f32.mxu0 %vm49_vm0, %v36_v18 }
  0x26   :  { %432 = vmatmul.mubr.msk.f32.gmra.mxu0 %vm49_vm0, %v37_v19 }
  0xca   :  { %v639_v21 = vpop.f32.mrf.mxu0 }
  0xcb   :  { %v170_v62 = vadd.f32 %v639_v21, %v648_v35 }
  0xcc   :  { %v641_v22 = vpop.f32.mrf.mxu0 }
  0xcd   :  { %v165_v0 = vadd.f32 %v648_v35, %v641_v22 }
  0xce   :  { %v415_v23 = vpop.f32.mrf.mxu0 }
  0xcf   :  { %v180_v58 = vadd.f32 %v415_v23, %v648_v35 }
  0xd0   :  { %v643_v24 = vpop.f32.mrf.mxu0 }
  0xd1   :  { %v175_v60 = vadd.f32 %v648_v35, %v643_v24 }
  0xd2   :  { %v418_v25 = vpop.f32.mrf.mxu0 }
  0xd3   :  { %v190_v54 = vadd.f32 %v418_v25, %v648_v35 }
  0xd4   :  { %v184_v26 = vpop.f32.mrf.mxu0 }
  0xd5   :  { %v185_v56 = vadd.f32 %v648_v35, %v184_v26 }
  0xd6   :  { %v421_v27 = vpop.f32.mrf.mxu0 }
  0xd7   :  { %v200_v50 = vadd.f32 %v421_v27, %v648_v35 }
  0xd8   :  { %v194_v28 = vpop.f32.mrf.mxu0 }
  0xd9   :  { %v195_v52 = vadd.f32 %v648_v35, %v194_v28 }
  0xda   :  { %v424_v29 = vpop.f32.mrf.mxu0 }
  0xdb   :  { %v210_v46 = vadd.f32 %v424_v29, %v648_v35 }
  0xdc   :  { %v204_v30 = vpop.f32.mrf.mxu0 }
  0xdd   :  { %v205_v48 = vadd.f32 %v648_v35, %v204_v30 }
  0xde   :  { %v427_v31 = vpop.f32.mrf.mxu0 }
  0xdf   :  { %v220_v42 = vadd.f32 %v427_v31, %v648_v35 }
  0xe0   :  { %v214_v32 = vpop.f32.mrf.mxu0 }
  0xe1   :  { %v215_v44 = vadd.f32 %v648_v35, %v214_v32 }
  0xe2   :  { %v430_v33 = vpop.f32.mrf.mxu0 }
  0xe3   :  { %v230_v40 = vadd.f32 %v430_v33, %v648_v35 }
  0xe4   :  { %v224_v34 = vpop.f32.mrf.mxu0 }
  0xe5   :  { %v225_v41 = vadd.f32 %v648_v35, %v224_v34 }
  0xe6   :  { %v433_v36 = vpop.f32.mrf.mxu0 }
  0xe7   :  { %v240_v37 = vadd.f32 %v433_v36, %v648_v35 }
  0xe8   :  { %v234_v38 = vpop.f32.mrf.mxu0 }
  0xe9   :  { %472 = vtanh.f32 %v240_v37  ;;  %v235_v39 = vadd.f32 %v648_v35, %v234_v38 }
  0xeb   :  { %474 = vtanh.f32 %v235_v39 }
  0xec   :  { %476 = vtanh.f32 %v230_v40 }
  0xed   :  { %478 = vtanh.f32 %v225_v41 }
  0xee   :  { %480 = vtanh.f32 %v220_v42 }
  0xef   :  { %482 = vtanh.f32 %v215_v44 }
  0xf0   :  { %484 = vtanh.f32 %v210_v46 }
  0xf1   :  { %486 = vtanh.f32 %v205_v48 }
  0xf2   :  { %488 = vtanh.f32 %v200_v50 }
  0xf3   :  { %490 = vtanh.f32 %v195_v52 }
  0xf4   :  { %492 = vtanh.f32 %v190_v54 }
  0xf5   :  { %494 = vtanh.f32 %v185_v56 }
  0xf6   :  { %v473_v43 = vpop.eup %472  ;;  %496 = vtanh.f32 %v180_v58 }
  0xf7   :  { %435 = vmatpush3.xpose.msra.mxu1 %v473_v43  ;;  %498 = vtanh.f32 %v175_v60 }
  0xf8   :  { %436 = vmatprep.subr.mxu1 %v528_v20  ;;  %v475_v45 = vpop.eup %474  ;;  %500 = vtanh.f32 %v170_v62 }
  0xf9   :  { %v477_v47 = vpop.eup %476  ;;  %502 = vtanh.f32 %v165_v0 }
  0xfa   :  { %v479_v49 = vpop.eup %478 }
  0xfb   :  { %437 = vmatpush3.xpose.msra.mxu1 %v475_v45  ;;  %v481_v51 = vpop.eup %480 }
  0xfc   :  { %438 = vmatprep.subr.mxu1 %v528_v20  ;;  %v483_v53 = vpop.eup %482 }
  0xfd   :  { %v485_v55 = vpop.eup %484 }
  0xfe   :  { %v487_v57 = vpop.eup %486 }
  0xff   :  { %439 = vmatpush3.xpose.msra.mxu1 %v477_v47  ;;  %v489_v59 = vpop.eup %488 }
 0x100   :  { %440 = vmatprep.subr.mxu1 %v528_v20  ;;  %v491_v61 = vpop.eup %490 }
 0x101   :  { %v493_v63 = vpop.eup %492 }
 0x102   :  { %v495_v1 = vpop.eup %494 }
 0x103   :  { %441 = vmatpush3.xpose.msra.mxu1 %v479_v49  ;;  %v497_v2 = vpop.eup %496 }
 0x104   :  { %442 = vmatprep.subr.mxu1 %v528_v20  ;;  %v499_v3 = vpop.eup %498 }
 0x105   :  { %v501_v4 = vpop.eup %500 }
 0x106   :  { %v503_v5 = vpop.eup %502 }
 0x107   :  { %443 = vmatpush3.xpose.msra.mxu1 %v481_v51 }
 0x108   :  { %444 = vmatprep.subr.mxu1 %v528_v20 }
 0x10b   :  { %445 = vmatpush3.xpose.msra.mxu1 %v483_v53 }
 0x10c   :  { %446 = vmatprep.subr.mxu1 %v528_v20 }
 0x10f   :  { %447 = vmatpush3.xpose.msra.mxu1 %v485_v55 }
 0x110   :  { %448 = vmatprep.subr.mxu1 %v528_v20 }
 0x113   :  { %449 = vmatpush3.xpose.msra.mxu1 %v487_v57 }
 0x114   :  { %450 = vmatprep.subr.mxu1 %v528_v20 }
 0x117   :  { %451 = vmatpush3.xpose.msra.mxu1 %v489_v59 }
 0x118   :  { %452 = vmatprep.subr.mxu1 %v528_v20 }
 0x11b   :  { %453 = vmatpush3.xpose.msra.mxu1 %v491_v61 }
 0x11c   :  { %454 = vmatprep.subr.mxu1 %v528_v20 }
 0x11f   :  { %455 = vmatpush3.xpose.msra.mxu1 %v493_v63 }
 0x120   :  { %456 = vmatprep.subr.mxu1 %v528_v20 }
 0x123   :  { %457 = vmatpush3.xpose.msra.mxu1 %v495_v1 }
 0x124   :  { %458 = vmatprep.subr.mxu1 %v528_v20 }
 0x127   :  { %459 = vmatpush3.xpose.msra.mxu1 %v497_v2 }
 0x128   :  { %460 = vmatprep.subr.mxu1 %v528_v20 }
 0x12b   :  { %461 = vmatpush3.xpose.msra.mxu1 %v499_v3 }
 0x12c   :  { %462 = vmatprep.subr.mxu1 %v528_v20 }
 0x12f   :  { %463 = vmatpush3.xpose.msra.mxu1 %v501_v4 }
 0x130   :  { %464 = vmatprep.subr.mxu1 %v528_v20 }
 0x133   :  { %465 = vmatpush3.xpose.msra.mxu1 %v503_v5 }
 0x136   :  { %467 = vmatmul.mubr.f32.vlgmr.msra.gmra.mxu1 %v259_v6 }
 0x1f6   :  { %v328_v8 = vpop.f32.mrf.mxu1 }
 0x1f7   :  { %v329_v9 = vadd.f32 %v328_v8, %v261_v7 }
 0x1f8   :  { %v468_v10 = vpop.f32.mrf.mxu1 }
 0x1f9   :  { %504 = vtanh.f32 %v329_v9 }
 0x206   :  { %v505_v11 = vpop.eup %504 }
 0x207   :  { %333 = vst [vmem:[#allocation3] sm:$0x1] %v505_v11 }
 0x208   :  { %517 = shalt.err (!%p514_p4)
}
 0x209   :  { %343 = dma.vmem_to_hbm [thread:$0]  %s341_s11, 16, %s698_s5, [#allocation4]  }
 0x20a   :  { %526 = dma.done.wait [#allocation4], 16  }
 0x20b   :  { %527 = vsyncadd [#allocation4], 4294967280 }
 0x20c   :  { %347 = vsyncpa [#allocation4], 1 }

</bundles_post_ra>
